<compile_context>
chip_gen: v5e
topology: v5e:2x2
jax: 0.10.0
libtpu: 0.0.40
codegen_flags: <defaults>
</compile_context>

<pallas_src>
import jax
import jax.numpy as jnp
from jax.experimental import pallas as pl
from jax.experimental.pallas import tpu as pltpu


def _round_up(x, m):
    return (x + m - 1) // m * m


def conv1x1_relu_kernel(x_ref, w_ref, b_ref, o_ref):
    # x_ref: (1, Cin, TM) bf16   w_ref: (Cout, Cin) bf16
    # b_ref: (Cout, 1)   f32     o_ref: (1, Cout, TM)
    acc = jnp.dot(w_ref[...], x_ref[0],
                  preferred_element_type=jnp.float32)      # MXU, f32 accumulate
    acc = acc + b_ref[...]                                  # f32 epilogue (bias)
    o_ref[0] = jnp.maximum(acc, 0.0).astype(o_ref.dtype)    # ReLU + single cast


def conv2d_1x1_relu(x_nchw, weight, bias, *, tile_m=512):
    """x_nchw: (N, Cin, H, W); weight: (Cout, Cin, 1, 1); bias: (Cout,)."""
    N, Cin, H, W = x_nchw.shape
    Cout = weight.shape[0]
    M = H * W

    # Pixel-tile size: lane-aligned (multiple of 128), capped by tile_m.
    TM = min(tile_m, _round_up(max(M, 1), 128))
    Mp = _round_up(M, TM)

    # NCHW -> (N, Cin, H*W) is a view; pad the pixel axis only if needed.
    x3d = x_nchw.reshape(N, Cin, M)
    if Mp != M:
        x3d = jnp.pad(x3d, ((0, 0), (0, 0), (0, Mp - M)))
    x3d = x3d.astype(jnp.bfloat16)
    w2d = weight.reshape(Cout, Cin).astype(jnp.bfloat16)    # already (Cout, Cin)
    b2d = bias.reshape(Cout, 1).astype(jnp.float32)

    grid = (N, Mp // TM)
    out_dtype = x_nchw.dtype

    out3d = pl.pallas_call(
        conv1x1_relu_kernel,
        out_shape=jax.ShapeDtypeStruct((N, Cout, Mp), out_dtype),
        grid_spec=pltpu.PrefetchScalarGridSpec(
            num_scalar_prefetch=0,
            grid=grid,
            in_specs=[
                pl.BlockSpec((1, Cin, TM), lambda n, m: (n, 0, m)),   # x tile
                pl.BlockSpec((Cout, Cin), lambda n, m: (0, 0)),       # W resident
                pl.BlockSpec((Cout, 1), lambda n, m: (0, 0)),         # b resident
            ],
            out_specs=pl.BlockSpec((1, Cout, TM), lambda n, m: (n, 0, m)),
        ),
        compiler_params=pltpu.CompilerParams(
            dimension_semantics=("parallel", "parallel")),
        cost_estimate=pl.CostEstimate(
            flops=2 * N * Cout * Cin * Mp,
            transcendentals=0,
            bytes_accessed=(N * Cin * Mp * 2            # x (bf16)
                            + Cout * Cin * 2            # W (bf16)
                            + N * Cout * Mp * jnp.dtype(out_dtype).itemsize),
        ),
    )(x3d, w2d, b2d)

    return out3d[:, :, :M].reshape(N, Cout, H, W)


def _reference(x, weight, bias):
    Cout, Cin = weight.shape[0], weight.shape[1]
    return jnp.maximum(
        jnp.einsum("nchw,oc->nohw", x, weight.reshape(Cout, Cin))
        + bias.reshape(1, Cout, 1, 1),
        0.0,
    )


if __name__ == "__main__":
    key = jax.random.PRNGKey(0)
    kx, kw, kb, kx2 = jax.random.split(key, 4)

    Cin, Cout = 576, 144
    weight = jax.random.normal(kw, (Cout, Cin, 1, 1), dtype=jnp.float32) * 0.05
    bias = jax.random.normal(kb, (Cout,), dtype=jnp.float32) * 0.05

    # 1) The module's shipped shape: x224 = randn([1, 576, 1, 1]).
    x = jax.random.normal(kx, (1, Cin, 1, 1), dtype=jnp.float32)
    out = jax.block_until_ready(conv2d_1x1_relu(x, weight, bias))
    ref = _reference(x, weight, bias)
    assert out.shape == (1, Cout, 1, 1), out.shape
    assert jnp.allclose(out, ref, atol=3e-2, rtol=3e-2)

    # 2) A larger spatial case that exercises the (batch, pixel-tile) grid,
    #    padding, and multi-tile pipelining.
    x_big = jax.random.normal(kx2, (2, Cin, 24, 32), dtype=jnp.float32)
    out_big = jax.block_until_ready(conv2d_1x1_relu(x_big, weight, bias))
    ref_big = _reference(x_big, weight, bias)
    assert out_big.shape == (2, Cout, 24, 32), out_big.shape
    assert jnp.allclose(out_big, ref_big, atol=3e-2, rtol=3e-2)

    print("KERNEL_OK")
</pallas_src>

<mosaic_0001>
module attributes {stable_mosaic.version = 11 : i64} {
  func.func @conv1x1_relu_kernel(%arg0: i32, %arg1: i32, %arg2: memref<1x576x128xbf16, #tpu.memory_space<vmem>>, %arg3: memref<144x576xbf16, #tpu.memory_space<vmem>>, %arg4: memref<144x1xf32, #tpu.memory_space<vmem>>, %arg5: memref<1x144x128xf32, #tpu.memory_space<vmem>>) attributes {dimension_semantics = [#tpu.dimension_semantics<parallel>, #tpu.dimension_semantics<parallel>], iteration_bounds = array<i64: 1, 1>, scalar_prefetch = 0 : i64, scratch_operands = 0 : i64, tpu.core_type = #tpu.core_type<tc>, window_params = [{transform_indices = @transform_0, window_bounds = array<i64: 1, 576, 128>}, {pipeline_mode = #tpu.pipeline_mode<synchronous>, transform_indices = @transform_1, window_bounds = array<i64: 144, 576>}, {pipeline_mode = #tpu.pipeline_mode<synchronous>, transform_indices = @transform_2, window_bounds = array<i64: 144, 1>}, {transform_indices = @transform_3, window_bounds = array<i64: 1, 144, 128>}]} {
    %c0 = arith.constant 0 : index
    %c0_0 = arith.constant 0 : index
    %0 = vector.load %arg3[%c0, %c0_0] : memref<144x576xbf16, #tpu.memory_space<vmem>>, vector<144x576xbf16>
    %c0_1 = arith.constant 0 : index
    %c0_2 = arith.constant 0 : index
    %c0_3 = arith.constant 0 : index
    %1 = vector.load %arg2[%c0_1, %c0_2, %c0_3] : memref<1x576x128xbf16, #tpu.memory_space<vmem>>, vector<1x576x128xbf16>
    %2 = vector.shape_cast %1 : vector<1x576x128xbf16> to vector<576x128xbf16>
    %cst = arith.constant dense<0.000000e+00> : vector<144x128xf32>
    %3 = tpu.matmul %0, %2, %cst {dimension_numbers = #tpu.dot_dimension_numbers<[1], [0], [0], [1], [0, 0, 1, 1], [], []>} : vector<144x576xbf16>, vector<576x128xbf16>, vector<144x128xf32> -> vector<144x128xf32>
    %c0_4 = arith.constant 0 : index
    %c0_5 = arith.constant 0 : index
    %4 = vector.load %arg4[%c0_4, %c0_5] : memref<144x1xf32, #tpu.memory_space<vmem>>, vector<144x1xf32>
    %5 = vector.broadcast %4 : vector<144x1xf32> to vector<144x128xf32>
    %6 = arith.addf %3, %5 : vector<144x128xf32>
    %cst_6 = arith.constant 0.000000e+00 : f32
    %7 = vector.broadcast %cst_6 : f32 to vector<144x128xf32>
    %8 = arith.maximumf %6, %7 : vector<144x128xf32>
    %c0_7 = arith.constant 0 : index
    %c0_8 = arith.constant 0 : index
    %c0_9 = arith.constant 0 : index
    %9 = vector.load %arg5[%c0_7, %c0_8, %c0_9] : memref<1x144x128xf32, #tpu.memory_space<vmem>>, vector<1x144x128xf32>
    %10 = vector.shape_cast %9 : vector<1x144x128xf32> to vector<144x128xf32>
    %11 = vector.shape_cast %8 : vector<144x128xf32> to vector<1x144x128xf32>
    tpu.vector_store %arg5[%c0_7, %c0_8, %c0_9], %11 {strides = array<i32>} : memref<1x144x128xf32, #tpu.memory_space<vmem>>, vector<1x144x128xf32>,
    return
  }
  func.func @transform_0(%arg0: i32, %arg1: i32) -> (i32, i32, i32) {
    %c0_i32 = arith.constant 0 : i32
    %c0_i32_0 = arith.constant 0 : i32
    return %arg0, %c0_i32, %arg1 : i32, i32, i32
  }
  func.func @transform_1(%arg0: i32, %arg1: i32) -> (i32, i32) {
    %c0_i32 = arith.constant 0 : i32
    %c0_i32_0 = arith.constant 0 : i32
    %c0_i32_1 = arith.constant 0 : i32
    return %c0_i32, %c0_i32_0 : i32, i32
  }
  func.func @transform_2(%arg0: i32, %arg1: i32) -> (i32, i32) {
    %c0_i32 = arith.constant 0 : i32
    %c0_i32_0 = arith.constant 0 : i32
    %c0_i32_1 = arith.constant 0 : i32
    return %c0_i32, %c0_i32_0 : i32, i32
  }
  func.func @transform_3(%arg0: i32, %arg1: i32) -> (i32, i32, i32) {
    %c0_i32 = arith.constant 0 : i32
    %c0_i32_0 = arith.constant 0 : i32
    return %arg0, %c0_i32, %arg1 : i32, i32, i32
  }
}

</mosaic_0001>

<bundles_post_ra>
// kernel: tpu_custom_call.1
= control target key start
LH: loop header
LB: loop body
LE: loop exit
PB: predicated region body
PF: predicated region fallthrough
CT: control target
= control target key end

     0   :  { %8 = vsyncpa [#allocation3], 0  ;;  %s1756_s0 = inlined_call_operand.hbm [shape: bf16[1,576,128], index: 0, kind: input, shape index: {}]   ;;  %s1757_s1 = inlined_call_operand.hbm [shape: bf16[144,576], index: 1, kind: input, shape index: {}]   ;;  %s1758_s2 = inlined_call_operand.vmem [shape: f32[144,1], index: 2, kind: input, shape index: {}]   ;;  %s1759_s3 = inlined_call_operand.hbm [shape: f32[1,144,128], index: 3, kind: output, shape index: {}]  }
   0x1   :  { %9 = vsyncpa [#allocation6], 0 }
   0x2   :  { %10 = vsyncpa [#allocation4], 0  ;;  %s15_s14 = sshll.u32 %s1756_s0, 4  ;;  %s1606_s15 = smov [#allocation2]   ;;  %s16_s14 = int_to_ptr.hbm [resolvable:$true] %s15_s14 }
   0x3   :  { %s17_s16 = sshll.u32 %s1606_s15, 4  ;;  %s28_s19 = sshll.u32 %s1757_s1, 4  ;;  %s18_s16 = int_to_ptr.vmem [resolvable:$true] %s17_s16  ;;  %s29_s19 = int_to_ptr.hbm [resolvable:$true] %s28_s19 }
   0x4   :  { %s1607_s20 = smov 64   ;;  %s1608_s21 = smov 4  }
   0x5   :  { %23 = dma.hbm_to_vmem [thread:$0]  %s16_s14, 4608, %s18_s16, [#allocation3], %s1607_s20, %s1607_s20, %s1608_s21  }
   0x6   :  { %s1609_s22 = smov [#allocation5]   ;;  %s1610_s24 = smov 320  }
   0x7   :  { %s30_s23 = sshll.u32 %s1609_s22, 4  ;;  %s1611_s25 = smov 20   ;;  %s31_s23 = int_to_ptr.vmem [resolvable:$true] %s30_s23 }
   0x8   :  { %36 = dma.hbm_to_vmem [thread:$0]  %s29_s19, 5760, %s31_s23, [#allocation6], %s1610_s24, %s1610_s24, %s1611_s25  }
   0x9   :  { %1600 = dma.done.wait [#allocation3], 4608  }
   0xa   :  { %1601 = vsyncadd [#allocation3], 4294962688 }
   0xb   :  { %1602 = dma.done.wait [#allocation6], 5760  }
   0xc   :  { %1603 = vsyncadd [#allocation6], 4294961536  ;;  %v1612_v0 = vmov 0   ;;  %v1462_v1 = vld [vmem:[#allocation2 + $0x38] sm:$0xff]  ;;  %v1461_v2 = vld [vmem:[#allocation2 + $0x30] sm:$0xff]  ;;  %vm723_vm0 = vcmask 523264  }
   0xd   :  { %1525 = vset.pattern.permute.xlu0 %v1612_v0  ;;  %1526 = vset.pattern.permute.xlu1 %v1612_v0  ;;  %v174_v3 = vld [vmem:[%s1758_s2] sm:$0xff]  ;;  %v1460_v4 = vld [vmem:[#allocation2 + $0x28] sm:$0xff]  ;;  %v176_v5 = vld [vmem:[%s1758_s2 + $0x10] sm:$0xff]  ;;  %s1063_s7 = sshll.u32 %s1759_s3, 4  ;;  %s1614_s8 = smov 128   ;;  %s1064_s7 = int_to_ptr.hbm [resolvable:$true] %s1063_s7 }
   0xe   :  { %1527 = vset.pattern.permute.xlu2 %v1612_v0  ;;  %1491 = vmatpush.bf16.msra.mxu1 %v1462_v1  ;;  %v175_v6 = vld [vmem:[%s1758_s2 + $0x8] sm:$0xff]  ;;  %v1459_v7 = vld [vmem:[#allocation2 + $0x20] sm:$0xff]  ;;  %v1458_v8 = vld [vmem:[#allocation2 + $0x18] sm:$0xff]  ;;  %s1615_s9 = smov 8  }
   0xf   :  { %1492 = vmatpush.bf16.msra.mxu2 %v1462_v1  ;;  %1493 = vmatpush.bf16.msra.mxu3 %v1462_v1  ;;  %v180_v9 = vld [vmem:[%s1758_s2 + $0x30] sm:$0xff]  ;;  %v177_v10 = vld [vmem:[%s1758_s2 + $0x18] sm:$0xff]  ;;  %v178_v12 = vld [vmem:[%s1758_s2 + $0x20] sm:$0xff] }
  0x10   :  { %751 = vmatpush.bf16.msra.mxu0 %v1462_v1  ;;  %194 = vperm.xlu0 %1525, %v174_v3   ;;  %v1457_v11 = vld [vmem:[#allocation2 + $0x10] sm:$0xff]  ;;  %v1456_v13 = vld [vmem:[#allocation2 + $0x8] sm:$0xff]  ;;  %v1455_v14 = vld [vmem:[#allocation2] sm:$0xff] }
  0x11   :  { %204 = vperm.xlu1 %1526, %v176_v5   ;;  %214 = vperm.xlu2 %1527, %v178_v12   ;;  %v1119_v15 = vld [vmem:[#allocation5 + $0x50] sm:$0xf]  ;;  %v183_v16 = vld [vmem:[%s1758_s2 + $0x48] sm:$0xff]  ;;  %v181_v17 = vld [vmem:[%s1758_s2 + $0x38] sm:$0xff] }
  0x12   :  { %1494 = vmatpush.bf16.msra.mxu1 %v1461_v2  ;;  %v1422_v18 = vld [vmem:[#allocation5 + $0x60] sm:$0xf0]  ;;  %v1159_v19 = vld [vmem:[#allocation5 + $0xa0] sm:$0xf]  ;;  %v1432_v20 = vld [vmem:[#allocation5 + $0xb0] sm:$0xf0] }
  0x13   :  { %1495 = vmatpush.bf16.msra.mxu2 %v1461_v2  ;;  %1496 = vmatpush.bf16.msra.mxu3 %v1461_v2  ;;  %v1478_v21 = vld [vmem:[#allocation2 + $0xb8] sm:$0xff]  ;;  %v1120_v24 = vor.u32 %v1422_v18, %v1119_v15  ;;  %v1160_v25 = vor.u32 %v1432_v20, %v1159_v19  ;;  %v1447_v26 = vld [vmem:[#allocation5 + $0x128] sm:$0xf0]  ;;  %v1079_v27 = vld [vmem:[#allocation5] sm:$0xf] }
  0x14   :  { %752 = vmatpush.bf16.msra.mxu0 %v1461_v2  ;;  %v1470_v22 = vld [vmem:[#allocation2 + $0x78] sm:$0xff]  ;;  %v1412_v28 = vld [vmem:[#allocation5 + $0x10] sm:$0xf0]  ;;  %v186_v36 = vld [vmem:[%s1758_s2 + $0x60] sm:$0xff] }
  0x15   :  { %v1219_v23 = vld [vmem:[#allocation5 + $0x118] sm:$0xf]  ;;  %v1469_v31 = vld [vmem:[#allocation2 + $0x70] sm:$0xff]  ;;  %v1080_v34 = vor.u32 %v1412_v28, %v1079_v27  ;;  %v179_v37 = vld [vmem:[%s1758_s2 + $0x28] sm:$0xff] }
  0x16   :  { %1497 = vmatpush.bf16.msra.mxu1 %v1460_v4  ;;  %v1486_v29 = vld [vmem:[#allocation2 + $0xf8] sm:$0xff]  ;;  %v1477_v32 = vld [vmem:[#allocation2 + $0xb0] sm:$0xff]  ;;  %v1220_v33 = vor.u32 %v1447_v26, %v1219_v23  ;;  %v1468_v38 = vld [vmem:[#allocation2 + $0x68] sm:$0xff] }
  0x17   :  { %1498 = vmatpush.bf16.msra.mxu2 %v1460_v4  ;;  %1499 = vmatpush.bf16.msra.mxu3 %v1460_v4  ;;  %v1490_v30 = vld [vmem:[#allocation2 + $0x118] sm:$0xff]  ;;  %v1485_v35 = vld [vmem:[#allocation2 + $0xf0] sm:$0xff]  ;;  %v1476_v39 = vld [vmem:[#allocation2 + $0xa8] sm:$0xff] }
  0x18   :  { %753 = vmatpush.bf16.msra.mxu0 %v1460_v4  ;;  %199 = vperm.xlu0 %1525, %v175_v6   ;;  %v184_v40 = vld [vmem:[%s1758_s2 + $0x50] sm:$0xff]  ;;  %v1484_v42 = vld [vmem:[#allocation2 + $0xe8] sm:$0xff]  ;;  %v1467_v43 = vld [vmem:[#allocation2 + $0x60] sm:$0xff] }
  0x19   :  { %209 = vperm.xlu1 %1526, %v177_v10   ;;  %v1489_v41 = vld [vmem:[#allocation2 + $0x110] sm:$0xff]  ;;  %219 = vperm.xlu2 %1527, %v179_v37   ;;  %v1475_v44 = vld [vmem:[#allocation2 + $0xa0] sm:$0xff]  ;;  %v1139_v45 = vld [vmem:[#allocation5 + $0x78] sm:$0xf] }
  0x1a   :  { %1500 = vmatpush.bf16.msra.mxu1 %v1459_v7  ;;  %v1488_v46 = vld [vmem:[#allocation2 + $0x108] sm:$0xff]  ;;  %v1437_v49 = vld [vmem:[#allocation5 + $0xd8] sm:$0xf0]  ;;  %v1483_v50 = vld [vmem:[#allocation2 + $0xe0] sm:$0xff] }
  0x1b   :  { %1501 = vmatpush.bf16.msra.mxu2 %v1459_v7  ;;  %1502 = vmatpush.bf16.msra.mxu3 %v1459_v7  ;;  %v1427_v47 = vld [vmem:[#allocation5 + $0x88] sm:$0xf0]  ;;  %v1179_v48 = vld [vmem:[#allocation5 + $0xc8] sm:$0xf]  ;;  %v189_v51 = vld [vmem:[%s1758_s2 + $0x78] sm:$0xff] }
  0x1c   :  { %754 = vmatpush.bf16.msra.mxu0 %v1459_v7  ;;  %v182_v52 = vld [vmem:[%s1758_s2 + $0x40] sm:$0xff]  ;;  %v1466_v53 = vld [vmem:[#allocation2 + $0x58] sm:$0xff]  ;;  %v187_v55 = vld [vmem:[%s1758_s2 + $0x68] sm:$0xff]  ;;  %v1140_v58 = vor.u32 %v1427_v47, %v1139_v45  ;;  %v1180_v59 = vor.u32 %v1437_v49, %v1179_v48 }
  0x1d   :  { %v1474_v54 = vld [vmem:[#allocation2 + $0x98] sm:$0xff]  ;;  %v1239_v56 = vld [vmem:[#allocation5 + $0x140] sm:$0xf]  ;;  %v1452_v60 = vld [vmem:[#allocation5 + $0x150] sm:$0xf0] }
  0x1e   :  { %1503 = vmatpush.bf16.msra.mxu1 %v1458_v8  ;;  %v1487_v57 = vld [vmem:[#allocation2 + $0x100] sm:$0xff]  ;;  %v1099_v61 = vld [vmem:[#allocation5 + $0x28] sm:$0xf]  ;;  %v1417_v62 = vld [vmem:[#allocation5 + $0x38] sm:$0xf0]  ;;  %v1240_v2 = vor.u32 %v1452_v60, %v1239_v56 }
  0x1f   :  { %1504 = vmatpush.bf16.msra.mxu2 %v1458_v8  ;;  %1505 = vmatpush.bf16.msra.mxu3 %v1458_v8  ;;  %v1482_v63 = vld [vmem:[#allocation2 + $0xd8] sm:$0xff]  ;;  %v1465_v0 = vld [vmem:[#allocation2 + $0x50] sm:$0xff]  ;;  %v1100_v3 = vor.u32 %v1417_v62, %v1099_v61  ;;  %v1464_v6 = vld [vmem:[#allocation2 + $0x48] sm:$0xff] }
  0x20   :  { %755 = vmatpush.bf16.msra.mxu0 %v1458_v8  ;;  %224 = vperm.xlu0 %1525, %v180_v9   ;;  %v1473_v1 = vld [vmem:[#allocation2 + $0x90] sm:$0xff]  ;;  %v185_v5 = vld [vmem:[%s1758_s2 + $0x58] sm:$0xff]  ;;  %v1472_v7 = vld [vmem:[#allocation2 + $0x88] sm:$0xff] }
  0x21   :  { %229 = vperm.xlu1 %1526, %v181_v17   ;;  %234 = vperm.xlu2 %1527, %v182_v52   ;;  %v1481_v4 = vld [vmem:[#allocation2 + $0xd0] sm:$0xff]  ;;  %v190_v8 = vld [vmem:[%s1758_s2 + $0x80] sm:$0xff]  ;;  %v1480_v9 = vld [vmem:[#allocation2 + $0xc8] sm:$0xff] }
  0x22   :  { %1506 = vmatpush.bf16.msra.mxu1 %v1457_v11  ;;  %v1463_v10 = vld [vmem:[#allocation2 + $0x40] sm:$0xff]  ;;  %v1199_v12 = vld [vmem:[#allocation5 + $0xf0] sm:$0xf]  ;;  %v1081_v15 = vld [vmem:[#allocation5 + $0x14] sm:$0xf0] }
  0x23   :  { %1507 = vmatpush.bf16.msra.mxu2 %v1457_v11  ;;  %1508 = vmatpush.bf16.msra.mxu3 %v1457_v11  ;;  %v188_v17 = vld [vmem:[%s1758_s2 + $0x70] sm:$0xff]  ;;  %v1411_v18 = vld [vmem:[#allocation5 + $0xc] sm:$0xf]  ;;  %v1414_v23 = vld [vmem:[#allocation5 + $0x20] sm:$0xf0] }
  0x24   :  { %756 = vmatpush.bf16.msra.mxu0 %v1457_v11  ;;  %v1471_v11 = vld [vmem:[#allocation2 + $0x80] sm:$0xff]  ;;  %v191_v26 = vld [vmem:[%s1758_s2 + $0x88] sm:$0xff]  ;;  %v1424_v48 = vld [vmem:[#allocation5 + $0x70] sm:$0xf0]  ;;  %s1613_s2 = smov [#allocation7]  }
  0x25   :  { %v1415_v27 = vld [vmem:[#allocation5 + $0x2c] sm:$0xf]  ;;  %v1101_v28 = vld [vmem:[#allocation5 + $0x3c] sm:$0xf0]  ;;  %v1141_v52 = vld [vmem:[#allocation5 + $0x8c] sm:$0xf0] }
  0x26   :  { %1509 = vmatpush.bf16.msra.mxu1 %v1456_v13  ;;  %v1135_v47 = vld [vmem:[#allocation5 + $0x60] sm:$0xf]  ;;  %v1429_v60 = vld [vmem:[#allocation5 + $0x98] sm:$0xf0]  ;;  %s1061_s4 = sshll.u32 %s1613_s2, 4  ;;  %s1062_s4 = int_to_ptr.vmem [resolvable:$true] %s1061_s4 }
  0x27   :  { %1510 = vmatpush.bf16.msra.mxu2 %v1456_v13  ;;  %1511 = vmatpush.bf16.msra.mxu3 %v1456_v13 }
  0x28   :  { %757 = vmatpush.bf16.msra.mxu0 %v1456_v13  ;;  %239 = vperm.xlu0 %1525, %v183_v16   ;;  %v1442_v13 = vld [vmem:[#allocation5 + $0x100] sm:$0xf0] }
  0x29   :  { %244 = vperm.xlu1 %1526, %v184_v40   ;;  %249 = vperm.xlu2 %1527, %v185_v5   ;;  %v1479_v16 = vld [vmem:[#allocation2 + $0xc0] sm:$0xff]  ;;  %v1200_v19 = vor.u32 %v1442_v13, %v1199_v12  ;;  %v1121_v40 = vld [vmem:[#allocation5 + $0x64] sm:$0xf0] }
  0x2a   :  { %1512 = vmatpush.bf16.msra.mxu1 %v1455_v14  ;;  %v1181_v12 = vld [vmem:[#allocation5 + $0xdc] sm:$0xf0]  ;;  %v1167_v13 = vld [vmem:[#allocation5 + $0xa8] sm:$0xf] }
  0x2b   :  { %1513 = vmatpush.bf16.msra.mxu2 %v1455_v14  ;;  %1514 = vmatpush.bf16.msra.mxu3 %v1455_v14 }
  0x2c   :  { %758 = vmatpush.bf16.msra.mxu0 %v1455_v14  ;;  %v1410_v14 = vld [vmem:[#allocation5 + $0x4] sm:$0xf] }
  0x2d   :  { %769 = vmatmul.bf16.vlgmr.msra.gmra.mxu1 %v1120_v24  ;;  %v1084_v20 = vor.u32 %v1410_v14, %v1081_v15  ;;  %v1433_v14 = vld [vmem:[#allocation5 + $0xb8] sm:$0xf0]  ;;  %v1436_v15 = vld [vmem:[#allocation5 + $0xd4] sm:$0xf] }
  0x2e   :  { %805 = vmatpush.bf16.msrb.mxu1 %v1470_v22  ;;  %779 = vmatmul.bf16.vlgmr.msra.gmra.mxu2 %v1160_v25  ;;  %v1095_v22 = vld [vmem:[#allocation5 + $0x10] sm:$0xf] }
  0x2f   :  { %859 = vmatpush.bf16.msrb.mxu2 %v1478_v21  ;;  %913 = vmatpush.bf16.msrb.mxu3 %v1486_v29  ;;  %v1089_v21 = vld [vmem:[#allocation5 + $0x1c] sm:$0xf0]  ;;  %v1096_v25 = vor.u32 %v1414_v23, %v1095_v22  ;;  %v1087_v29 = vld [vmem:[#allocation5 + $0x8] sm:$0xf]  ;;  %v1440_v23 = vld [vmem:[#allocation5 + $0xf4] sm:$0xf] }
  0x30   :  { %971 = vmatpush.bf16.msrb.mxu0 %v1490_v30  ;;  %794 = vmatmul.bf16.vlgmr.msra.gmra.mxu3 %v1220_v33  ;;  %v1092_v24 = vor.u32 %v1411_v18, %v1089_v21  ;;  %v1413_v30 = vld [vmem:[#allocation5 + $0x18] sm:$0xf0]  ;;  %v1189_v18 = vld [vmem:[#allocation5 + $0xe4] sm:$0xf0] }
  0x31   :  { %759 = vmatmul.bf16.vlgmr.msra.gmra.mxu0 %v1080_v34  ;;  %254 = vperm.xlu0 %1525, %v186_v36   ;;  %v1088_v33 = vor.u32 %v1413_v30, %v1087_v29  ;;  %v1109_v34 = vld [vmem:[#allocation5 + $0x44] sm:$0xf0]  ;;  %v1419_v36 = vld [vmem:[#allocation5 + $0x48] sm:$0xf0]  ;;  %v1192_v21 = vor.u32 %v1436_v15, %v1189_v18  ;;  %v1209_v30 = vld [vmem:[#allocation5 + $0x10c] sm:$0xf0] }
  0x32   :  { %806 = vmatpush.bf16.msrb.mxu1 %v1469_v31  ;;  %259 = vperm.xlu1 %1526, %v187_v55   ;;  %v1416_v31 = vld [vmem:[#allocation5 + $0x34] sm:$0xf]  ;;  %v1426_v55 = vld [vmem:[#allocation5 + $0x84] sm:$0xf]  ;;  %v1453_v18 = vld [vmem:[#allocation5 + $0x158] sm:$0xf0] }
  0x33   :  { %860 = vmatpush.bf16.msrb.mxu2 %v1477_v32  ;;  %914 = vmatpush.bf16.msrb.mxu3 %v1485_v35  ;;  %v1104_v32 = vor.u32 %v1415_v27, %v1101_v28  ;;  %v1115_v35 = vld [vmem:[#allocation5 + $0x38] sm:$0xf]  ;;  %v1112_v37 = vor.u32 %v1416_v31, %v1109_v34  ;;  %v1441_v27 = vld [vmem:[#allocation5 + $0xfc] sm:$0xf]  ;;  %v1215_v31 = vld [vmem:[#allocation5 + $0x100] sm:$0xf] }
  0x34   :  { %972 = vmatpush.bf16.msrb.mxu0 %v1489_v41  ;;  %264 = vperm.xlu2 %1527, %v188_v17   ;;  %v1107_v41 = vld [vmem:[#allocation5 + $0x30] sm:$0xf]  ;;  %v1168_v17 = vor.u32 %v1433_v14, %v1167_v13  ;;  %v1212_v34 = vor.u32 %v1441_v27, %v1209_v30 }
  0x36   :  { %807 = vmatpush.bf16.msrb.mxu1 %v1468_v38  ;;  %v1116_v38 = vor.u32 %v1419_v36, %v1115_v35 }
  0x37   :  { %861 = vmatpush.bf16.msrb.mxu2 %v1476_v39  ;;  %915 = vmatpush.bf16.msrb.mxu3 %v1484_v42  ;;  %v1420_v39 = vld [vmem:[#allocation5 + $0x54] sm:$0xf]  ;;  %v1418_v42 = vld [vmem:[#allocation5 + $0x40] sm:$0xf0] }
  0x38   :  { %973 = vmatpush.bf16.msrb.mxu0 %v1488_v46  ;;  %v1108_v45 = vor.u32 %v1418_v42, %v1107_v41  ;;  %v1129_v46 = vld [vmem:[#allocation5 + $0x6c] sm:$0xf0] }
  0x39   :  { %269 = vperm.xlu0 %1525, %v189_v51   ;;  %v1425_v51 = vld [vmem:[#allocation5 + $0x7c] sm:$0xf]  ;;  %v1221_v42 = vld [vmem:[#allocation5 + $0x12c] sm:$0xf0] }
  0x3a   :  { %808 = vmatpush.bf16.msrb.mxu1 %v1467_v43  ;;  %274 = vperm.xlu1 %1526, %v190_v8   ;;  %v1421_v43 = vld [vmem:[#allocation5 + $0x5c] sm:$0xf]  ;;  %v1144_v56 = vor.u32 %v1425_v51, %v1141_v52  ;;  %v1434_v8 = vld [vmem:[#allocation5 + $0xc0] sm:$0xf0] }
  0x3b   :  { %862 = vmatpush.bf16.msrb.mxu2 %v1475_v44  ;;  %916 = vmatpush.bf16.msrb.mxu3 %v1483_v50  ;;  %v1124_v44 = vor.u32 %v1420_v39, %v1121_v40  ;;  %v1132_v49 = vor.u32 %v1421_v43, %v1129_v46  ;;  %v1136_v50 = vor.u32 %v1424_v48, %v1135_v47  ;;  %v1445_v40 = vld [vmem:[#allocation5 + $0x11c] sm:$0xf]  ;;  %v1207_v43 = vld [vmem:[#allocation5 + $0xf8] sm:$0xf]  ;;  %v1446_v46 = vld [vmem:[#allocation5 + $0x124] sm:$0xf] }
  0x3c   :  { %974 = vmatpush.bf16.msrb.mxu0 %v1487_v57  ;;  %279 = vperm.xlu2 %1527, %v191_v26   ;;  %v1438_v26 = vld [vmem:[#allocation5 + $0xe0] sm:$0xf0]  ;;  %v1224_v47 = vor.u32 %v1445_v40, %v1221_v42  ;;  %v1449_v51 = vld [vmem:[#allocation5 + $0x138] sm:$0xf0] }
  0x3d   :  { %774 = vmatmul.bf16.gmra.mxu1 %v1140_v58  ;;  %v1149_v58 = vld [vmem:[#allocation5 + $0x94] sm:$0xf0] }
  0x3e   :  { %809 = vmatpush.bf16.msrb.mxu1 %v1466_v53  ;;  %784 = vmatmul.bf16.gmra.mxu2 %v1180_v59  ;;  %v1127_v53 = vld [vmem:[#allocation5 + $0x58] sm:$0xf]  ;;  %v1155_v59 = vld [vmem:[#allocation5 + $0x88] sm:$0xf]  ;;  %v1152_v61 = vor.u32 %v1426_v55, %v1149_v58 }
  0x3f   :  { %863 = vmatpush.bf16.msrb.mxu2 %v1474_v54  ;;  %917 = vmatpush.bf16.msrb.mxu3 %v1482_v63  ;;  %v1423_v54 = vld [vmem:[#allocation5 + $0x68] sm:$0xf0]  ;;  %v1156_v62 = vor.u32 %v1429_v60, %v1155_v59  ;;  %v1430_v63 = vld [vmem:[#allocation5 + $0xa4] sm:$0xf] }
  0x40   :  { %799 = vmatmul.bf16.gmra.mxu3 %v1240_v2  ;;  %v1128_v57 = vor.u32 %v1423_v54, %v1127_v53  ;;  %v1428_v2 = vld [vmem:[#allocation5 + $0x90] sm:$0xf0]  ;;  %v1450_v60 = vld [vmem:[#allocation5 + $0x144] sm:$0xf] }
  0x41   :  { %764 = vmatmul.bf16.gmra.mxu0 %v1100_v3  ;;  %v1431_v3 = vld [vmem:[#allocation5 + $0xac] sm:$0xf] }
  0x42   :  { %810 = vmatpush.bf16.msrb.mxu1 %v1465_v0  ;;  %v1161_v0 = vld [vmem:[#allocation5 + $0xb4] sm:$0xf0] }
  0x43   :  { %864 = vmatpush.bf16.msrb.mxu2 %v1473_v1  ;;  %918 = vmatpush.bf16.msrb.mxu3 %v1481_v4  ;;  %v1147_v1 = vld [vmem:[#allocation5 + $0x80] sm:$0xf]  ;;  %v1164_v4 = vor.u32 %v1430_v63, %v1161_v0  ;;  %v1448_v0 = vld [vmem:[#allocation5 + $0x130] sm:$0xf0] }
  0x44   :  { %v1148_v5 = vor.u32 %v1428_v2, %v1147_v1  ;;  %v1227_v63 = vld [vmem:[#allocation5 + $0x120] sm:$0xf]  ;;  %v1451_v2 = vld [vmem:[#allocation5 + $0x14c] sm:$0xf] }
  0x46   :  { %811 = vmatpush.bf16.msrb.mxu1 %v1464_v6  ;;  %v1169_v6 = vld [vmem:[#allocation5 + $0xbc] sm:$0xf0] }
  0x47   :  { %865 = vmatpush.bf16.msrb.mxu2 %v1472_v7  ;;  %919 = vmatpush.bf16.msrb.mxu3 %v1480_v9  ;;  %v1175_v7 = vld [vmem:[#allocation5 + $0xb0] sm:$0xf]  ;;  %v1172_v9 = vor.u32 %v1431_v3, %v1169_v6 }
  0x48   :  { %v1255_v6 = vld [vmem:[#allocation5 + $0x150] sm:$0xf] }
  0x4a   :  { %812 = vmatpush.bf16.msrb.mxu1 %v1463_v10  ;;  %v1176_v10 = vor.u32 %v1434_v8, %v1175_v7  ;;  %v1454_v7 = vld [vmem:[#allocation5 + $0x160] sm:$0xf0] }
  0x4b   :  { %866 = vmatpush.bf16.msrb.mxu2 %v1471_v11  ;;  %920 = vmatpush.bf16.msrb.mxu3 %v1479_v16  ;;  %v1435_v11 = vld [vmem:[#allocation5 + $0xcc] sm:$0xf] }
  0x4c   :  { %v1184_v16 = vor.u32 %v1435_v11, %v1181_v12  ;;  %v1256_v11 = vor.u32 %v1454_v7, %v1255_v6 }
  0x4d   :  { %813 = vmatmul.bf16.vlgmr.msrb.gmra.mxu1 %v1084_v20  ;;  %v1439_v20 = vld [vmem:[#allocation5 + $0xe8] sm:$0xf0] }
  0x4e   :  { %789 = vmatmul.bf16.gmra.mxu2 %v1200_v19  ;;  %v1195_v19 = vld [vmem:[#allocation5 + $0xd8] sm:$0xf] }
  0x4f   :  { %v1196_v22 = vor.u32 %v1439_v20, %v1195_v19 }
  0x50   :  { %921 = vmatmul.bf16.vlgmr.msrb.gmra.mxu3 %v1092_v24  ;;  %v1201_v24 = vld [vmem:[#allocation5 + $0x104] sm:$0xf0] }
  0x51   :  { %1401 = vmatmul.msk.bf16.vlgmr.msrb.gmra.mxu0 %vm723_vm0, %v1096_v25  ;;  %v1187_v25 = vld [vmem:[#allocation5 + $0xd0] sm:$0xf]  ;;  %v1204_v28 = vor.u32 %v1440_v23, %v1201_v24 }
  0x52   :  { %v1188_v29 = vor.u32 %v1438_v26, %v1187_v25 }
  0x5d   :  { %818 = vmatmul.bf16.gmra.mxu1 %v1104_v32  ;;  %v1444_v32 = vld [vmem:[#allocation5 + $0x110] sm:$0xf0] }
  0x5e   :  { %867 = vmatmul.bf16.vlgmr.msrb.gmra.mxu2 %v1088_v33  ;;  %v1216_v35 = vor.u32 %v1444_v32, %v1215_v31 }
  0x60   :  { %926 = vmatmul.bf16.gmra.mxu3 %v1112_v37 }
  0x61   :  { %1402 = vmatmul.msk.bf16.gmra.mxu0 %vm723_vm0, %v1116_v38 }
  0x6d   :  { %823 = vmatmul.bf16.gmra.mxu1 %v1124_v44  ;;  %v1443_v44 = vld [vmem:[#allocation5 + $0x108] sm:$0xf0] }
  0x6e   :  { %872 = vmatmul.bf16.gmra.mxu2 %v1108_v45  ;;  %v1208_v48 = vor.u32 %v1443_v44, %v1207_v43 }
  0x70   :  { %931 = vmatmul.bf16.gmra.mxu3 %v1132_v49  ;;  %v1229_v49 = vld [vmem:[#allocation5 + $0x134] sm:$0xf0] }
  0x71   :  { %1403 = vmatmul.msk.bf16.gmra.mxu0 %vm723_vm0, %v1136_v50  ;;  %v1235_v50 = vld [vmem:[#allocation5 + $0x128] sm:$0xf]  ;;  %v1232_v54 = vor.u32 %v1446_v46, %v1229_v49 }
  0x72   :  { %v1236_v55 = vor.u32 %v1449_v51, %v1235_v50 }
  0x7d   :  { %828 = vmatmul.bf16.gmra.mxu1 %v1144_v56 }
  0x7e   :  { %877 = vmatmul.bf16.gmra.mxu2 %v1128_v57 }
  0x80   :  { %936 = vmatmul.bf16.gmra.mxu3 %v1152_v61 }
  0x81   :  { %1404 = vmatmul.msk.bf16.gmra.mxu0 %vm723_vm0, %v1156_v62  ;;  %v1241_v62 = vld [vmem:[#allocation5 + $0x154] sm:$0xf0] }
  0x82   :  { %v1244_v3 = vor.u32 %v1450_v60, %v1241_v62 }
  0x8d   :  { %833 = vmatmul.bf16.gmra.mxu1 %v1164_v4  ;;  %v1228_v4 = vor.u32 %v1448_v0, %v1227_v63 }
  0x8e   :  { %882 = vmatmul.bf16.gmra.mxu2 %v1148_v5  ;;  %v1249_v5 = vld [vmem:[#allocation5 + $0x15c] sm:$0xf0] }
  0x90   :  { %941 = vmatmul.bf16.gmra.mxu3 %v1172_v9 }
  0x91   :  { %1405 = vmatmul.msk.bf16.gmra.mxu0 %vm723_vm0, %v1176_v10  ;;  %v1252_v10 = vor.u32 %v1451_v2, %v1249_v5 }
  0x9d   :  { %838 = vmatmul.bf16.gmra.mxu1 %v1184_v16 }
  0x9e   :  { %887 = vmatmul.bf16.gmra.mxu2 %v1168_v17  ;;  %v1247_v17 = vld [vmem:[#allocation5 + $0x148] sm:$0xf] }
  0x9f   :  { %v1248_v20 = vor.u32 %v1453_v18, %v1247_v17 }
  0xa0   :  { %946 = vmatmul.bf16.gmra.mxu3 %v1192_v21  ;;  %v195_v21 = vpop.permute.xlu0 %194 }
  0xa1   :  { %1406 = vmatmul.msk.bf16.gmra.mxu0 %vm723_vm0, %v1196_v22 }
  0xa8   :  { %v200_v32 = vpop.permute.xlu0 %199 }
  0xaa   :  { %v1702_v33 = vpop.f32.mrf.mxu1 }
  0xad   :  { %843 = vmatmul.bf16.gmra.mxu1 %v1204_v28 }
  0xae   :  { %892 = vmatmul.bf16.gmra.mxu2 %v1188_v29  ;;  %v760_v36 = vpop.f32.mrf.mxu0 }
  0xaf   :  { %v761_v24 = vadd.f32 %v760_v36, %v195_v21 }
  0xb0   :  { %951 = vmatmul.bf16.gmra.mxu3 %v1212_v34 }
  0xb1   :  { %v1704_v37 = vpop.f32.mrf.mxu2  ;;  %1407 = vmatmul.msk.bf16.gmra.mxu0 %vm723_vm0, %v1216_v35 }
  0xb2   :  { %v1707_v38 = vpop.f32.mrf.mxu1 }
  0xb3   :  { %v1709_v39 = vpop.f32.mrf.mxu3 }
  0xb6   :  { %v1711_v41 = vpop.f32.mrf.mxu0 }
  0xb7   :  { %v763_v34 = vadd.f32 %v1711_v41, %v200_v32 }
  0xb9   :  { %v1713_v45 = vpop.f32.mrf.mxu2 }
  0xba   :  { %v1715_v52 = vpop.f32.mrf.mxu1 }
  0xbb   :  { %v1717_v53 = vpop.f32.mrf.mxu3 }
  0xbd   :  { %848 = vmatmul.bf16.gmra.mxu1 %v1224_v47  ;;  %v205_v47 = vpop.permute.xlu1 %204 }
  0xbe   :  { %897 = vmatmul.bf16.gmra.mxu2 %v1208_v48  ;;  %v765_v56 = vpop.f32.mrf.mxu0 }
  0xbf   :  { %v766_v50 = vadd.f32 %v765_v56, %v205_v47 }
  0xc0   :  { %956 = vmatmul.bf16.gmra.mxu3 %v1232_v54 }
  0xc1   :  { %v1719_v57 = vpop.f32.mrf.mxu2  ;;  %1408 = vmatmul.msk.bf16.gmra.mxu0 %vm723_vm0, %v1236_v55 }
  0xc2   :  { %v1722_v58 = vpop.f32.mrf.mxu1 }
  0xc3   :  { %v1724_v59 = vpop.f32.mrf.mxu3 }
  0xc6   :  { %v1726_v61 = vpop.f32.mrf.mxu0 }
  0xc9   :  { %v1728_v1 = vpop.f32.mrf.mxu2 }
  0xca   :  { %v814_v8 = vpop.f32.mrf.mxu1 }
  0xcb   :  { %v1730_v9 = vpop.f32.mrf.mxu3  ;;  %v815_v26 = vadd.f32 %v814_v8, %v761_v24 }
  0xcd   :  { %853 = vmatmul.bf16.gmra.mxu1 %v1244_v3  ;;  %v210_v3 = vpop.permute.xlu1 %209 }
  0xce   :  { %902 = vmatmul.bf16.gmra.mxu2 %v1228_v4  ;;  %v976_v12 = vpop.f32.mrf.mxu0  ;;  %v768_v4 = vadd.f32 %v1726_v61, %v210_v3 }
  0xd0   :  { %961 = vmatmul.bf16.gmra.mxu3 %v1252_v10 }
  0xd1   :  { %v1732_v13 = vpop.f32.mrf.mxu2  ;;  %1409 = vmatmul.msk.bf16.gmra.mxu0 %vm723_vm0, %v1256_v11  ;;  %v215_v11 = vpop.permute.xlu2 %214 }
  0xd2   :  { %v816_v14 = vpop.f32.mrf.mxu1 }
  0xd3   :  { %v922_v15 = vpop.f32.mrf.mxu3  ;;  %v817_v42 = vadd.f32 %v816_v14, %v763_v34 }
  0xd6   :  { %v978_v16 = vpop.f32.mrf.mxu0 }
  0xd9   :  { %v1735_v19 = vpop.f32.mrf.mxu2 }
  0xda   :  { %v819_v22 = vpop.f32.mrf.mxu1 }
  0xdb   :  { %v924_v23 = vpop.f32.mrf.mxu3  ;;  %v820_v55 = vadd.f32 %v819_v22, %v766_v50 }
  0xde   :  { %907 = vmatmul.bf16.gmra.mxu2 %v1248_v20  ;;  %v981_v25 = vpop.f32.mrf.mxu0 }
  0xe1   :  { %v868_v27 = vpop.f32.mrf.mxu2 }
  0xe2   :  { %v869_v28 = vadd.f32 %v868_v27, %v815_v26  ;;  %v821_v29 = vpop.f32.mrf.mxu1  ;;  %v220_v26 = vpop.permute.xlu2 %219 }
  0xe3   :  { %v927_v31 = vpop.f32.mrf.mxu3  ;;  %v822_v7 = vadd.f32 %v821_v29, %v768_v4  ;;  %v773_v27 = vadd.f32 %v1707_v38, %v220_v26 }
  0xe4   :  { %v923_v30 = vadd.f32 %v922_v15, %v869_v28 }
  0xe6   :  { %v977_v35 = vadd.f32 %v976_v12, %v923_v30  ;;  %v983_v40 = vpop.f32.mrf.mxu0 }
  0xe8   :  { %v1021_v43 = vmax.f32 %v977_v35, 0.0 }
  0xe9   :  { %v870_v44 = vpop.f32.mrf.mxu2 }
  0xea   :  { %1039 = vst [vmem:[#allocation7] sm:$0xff] %v1021_v43  ;;  %v871_v46 = vadd.f32 %v870_v44, %v817_v42  ;;  %v824_v36 = vpop.f32.mrf.mxu1  ;;  %v225_v42 = vpop.permute.xlu0 %224 }
  0xeb   :  { %v929_v49 = vpop.f32.mrf.mxu3  ;;  %v776_v43 = vadd.f32 %v1715_v52, %v225_v42  ;;  %v235_v52 = vpop.permute.xlu2 %234 }
  0xec   :  { %v925_v48 = vadd.f32 %v924_v23, %v871_v46 }
  0xee   :  { %v979_v51 = vadd.f32 %v978_v16, %v925_v48  ;;  %v986_v54 = vpop.f32.mrf.mxu0  ;;  %v771_v16 = vadd.f32 %v1702_v33, %v215_v11 }
  0xf0   :  { %v1022_v60 = vmax.f32 %v979_v51, 0.0  ;;  %v825_v20 = vadd.f32 %v824_v36, %v771_v16  ;;  %v230_v51 = vpop.permute.xlu1 %229 }
  0xf1   :  { %v873_v62 = vpop.f32.mrf.mxu2 }
  0xf2   :  { %1040 = vst [vmem:[#allocation7 + $0x8] sm:$0xff] %v1022_v60  ;;  %v874_v63 = vadd.f32 %v873_v62, %v820_v55  ;;  %v826_v41 = vpop.f32.mrf.mxu1  ;;  %v778_v55 = vadd.f32 %v1722_v58, %v230_v51 }
  0xf3   :  { %v932_v2 = vpop.f32.mrf.mxu3  ;;  %v827_v29 = vadd.f32 %v826_v41, %v773_v27 }
  0xf4   :  { %v928_v0 = vadd.f32 %v927_v31, %v874_v63 }
  0xf6   :  { %v982_v5 = vadd.f32 %v981_v25, %v928_v0  ;;  %v988_v6 = vpop.f32.mrf.mxu0 }
  0xf8   :  { %v1023_v8 = vmax.f32 %v982_v5, 0.0  ;;  %v781_v5 = vadd.f32 %v1704_v37, %v235_v52 }
  0xf9   :  { %v875_v10 = vpop.f32.mrf.mxu2 }
  0xfa   :  { %1041 = vst [vmem:[#allocation7 + $0x10] sm:$0xff] %v1023_v8  ;;  %v876_v56 = vadd.f32 %v875_v10, %v822_v7  ;;  %v829_v12 = vpop.f32.mrf.mxu1 }
  0xfb   :  { %v934_v15 = vpop.f32.mrf.mxu3  ;;  %v830_v46 = vadd.f32 %v829_v12, %v776_v43  ;;  %v240_v12 = vpop.permute.xlu0 %239 }
  0xfc   :  { %v930_v14 = vadd.f32 %v929_v49, %v876_v56 }
  0xfe   :  { %v984_v17 = vadd.f32 %v983_v40, %v930_v14  ;;  %v991_v18 = vpop.f32.mrf.mxu0 }
 0x100   :  { %v1024_v21 = vmax.f32 %v984_v17, 0.0 }
 0x101   :  { %v878_v22 = vpop.f32.mrf.mxu2 }
 0x102   :  { %1042 = vst [vmem:[#allocation7 + $0x18] sm:$0xff] %v1024_v21  ;;  %v879_v61 = vadd.f32 %v878_v22, %v825_v20  ;;  %v831_v23 = vpop.f32.mrf.mxu1 }
 0x103   :  { %v937_v25 = vpop.f32.mrf.mxu3  ;;  %v832_v62 = vadd.f32 %v831_v23, %v778_v55 }
 0x104   :  { %v933_v24 = vadd.f32 %v932_v2, %v879_v61  ;;  %v245_v61 = vpop.permute.xlu1 %244 }
 0x106   :  { %v987_v28 = vadd.f32 %v986_v54, %v933_v24  ;;  %v993_v32 = vpop.f32.mrf.mxu0  ;;  %v786_v24 = vadd.f32 %v1719_v57, %v245_v61 }
 0x108   :  { %v1025_v30 = vmax.f32 %v987_v28, 0.0 }
 0x109   :  { %v880_v31 = vpop.f32.mrf.mxu2 }
 0x10a   :  { %1043 = vst [vmem:[#allocation7 + $0x20] sm:$0xff] %v1025_v30  ;;  %v881_v33 = vadd.f32 %v880_v31, %v827_v29  ;;  %v834_v34 = vpop.f32.mrf.mxu1 }
 0x10b   :  { %v939_v40 = vpop.f32.mrf.mxu3  ;;  %v835_v8 = vadd.f32 %v834_v34, %v781_v5 }
 0x10c   :  { %v935_v35 = vadd.f32 %v934_v15, %v881_v33  ;;  %v783_v15 = vadd.f32 %v1713_v45, %v240_v12  ;;  %v250_v33 = vpop.permute.xlu2 %249 }
 0x10d   :  { %v788_v34 = vadd.f32 %v1728_v1, %v250_v33 }
 0x10e   :  { %v989_v44 = vadd.f32 %v988_v6, %v935_v35  ;;  %v996_v38 = vpop.f32.mrf.mxu0 }
 0x110   :  { %v1026_v47 = vmax.f32 %v989_v44, 0.0 }
 0x111   :  { %v883_v36 = vpop.f32.mrf.mxu2 }
 0x112   :  { %1044 = vst [vmem:[#allocation7 + $0x28] sm:$0xff] %v1026_v47  ;;  %v884_v48 = vadd.f32 %v883_v36, %v830_v46  ;;  %v836_v54 = vpop.f32.mrf.mxu1  ;;  %v255_v36 = vpop.permute.xlu0 %254 }
 0x113   :  { %v942_v50 = vpop.f32.mrf.mxu3 }
 0x114   :  { %v938_v49 = vadd.f32 %v937_v25, %v884_v48 }
 0x116   :  { %v992_v60 = vadd.f32 %v991_v18, %v938_v49  ;;  %v998_v4 = vpop.f32.mrf.mxu0  ;;  %v837_v18 = vadd.f32 %v836_v54, %v783_v15 }
 0x118   :  { %v1027_v63 = vmax.f32 %v992_v60, 0.0 }
 0x119   :  { %v885_v41 = vpop.f32.mrf.mxu2 }
 0x11a   :  { %1045 = vst [vmem:[#allocation7 + $0x30] sm:$0xff] %v1027_v63  ;;  %v886_v0 = vadd.f32 %v885_v41, %v832_v62  ;;  %v839_v7 = vpop.f32.mrf.mxu1  ;;  %v260_v62 = vpop.permute.xlu1 %259 }
 0x11b   :  { %v944_v3 = vpop.f32.mrf.mxu3  ;;  %v840_v27 = vadd.f32 %v839_v7, %v786_v24  ;;  %v793_v41 = vadd.f32 %v1735_v19, %v260_v62  ;;  %v270_v15 = vpop.permute.xlu0 %269 }
 0x11c   :  { %v940_v2 = vadd.f32 %v939_v40, %v886_v0 }
 0x11e   :  { %v994_v6 = vadd.f32 %v993_v32, %v940_v2  ;;  %v1001_v17 = vpop.f32.mrf.mxu0 }
 0x120   :  { %v1028_v10 = vmax.f32 %v994_v6, 0.0 }
 0x121   :  { %v888_v56 = vpop.f32.mrf.mxu2 }
 0x122   :  { %1046 = vst [vmem:[#allocation7 + $0x38] sm:$0xff] %v1028_v10  ;;  %v889_v11 = vadd.f32 %v888_v56, %v835_v8  ;;  %v841_v21 = vpop.f32.mrf.mxu1 }
 0x123   :  { %v947_v14 = vpop.f32.mrf.mxu3  ;;  %v842_v40 = vadd.f32 %v841_v21, %v788_v34 }
 0x124   :  { %v943_v58 = vadd.f32 %v942_v50, %v889_v11 }
 0x126   :  { %v997_v16 = vadd.f32 %v996_v38, %v943_v58  ;;  %v1003_v30 = vpop.f32.mrf.mxu0  ;;  %v791_v38 = vadd.f32 %v1732_v13, %v255_v36  ;;  %v265_v13 = vpop.permute.xlu2 %264 }
 0x127   :  { %v796_v8 = vadd.f32 %v1709_v39, %v265_v13 }
 0x128   :  { %v1029_v20 = vmax.f32 %v997_v16, 0.0 }
 0x129   :  { %v890_v22 = vpop.f32.mrf.mxu2 }
 0x12a   :  { %1047 = vst [vmem:[#allocation7 + $0x40] sm:$0xff] %v1029_v20  ;;  %v891_v37 = vadd.f32 %v890_v22, %v837_v18  ;;  %v844_v31 = vpop.f32.mrf.mxu1 }
 0x12b   :  { %v949_v26 = vpop.f32.mrf.mxu3  ;;  %v845_v50 = vadd.f32 %v844_v31, %v791_v38 }
 0x12c   :  { %v945_v23 = vadd.f32 %v944_v3, %v891_v37 }
 0x12e   :  { %v999_v25 = vadd.f32 %v998_v4, %v945_v23  ;;  %v1006_v46 = vpop.f32.mrf.mxu0  ;;  %v275_v23 = vpop.permute.xlu1 %274 }
 0x12f   :  { %v280_v31 = vpop.permute.xlu2 %279 }
 0x130   :  { %v1030_v28 = vmax.f32 %v999_v25, 0.0 }
 0x131   :  { %v893_v29 = vpop.f32.mrf.mxu2 }
 0x132   :  { %1048 = vst [vmem:[#allocation7 + $0x48] sm:$0xff] %v1030_v28  ;;  %v894_v45 = vadd.f32 %v893_v29, %v840_v27  ;;  %v846_v48 = vpop.f32.mrf.mxu1 }
 0x133   :  { %v952_v44 = vpop.f32.mrf.mxu3  ;;  %v847_v2 = vadd.f32 %v846_v48, %v793_v41 }
 0x134   :  { %v948_v32 = vadd.f32 %v947_v14, %v894_v45 }
 0x136   :  { %v1002_v35 = vadd.f32 %v1001_v17, %v948_v32  ;;  %v1008_v63 = vpop.f32.mrf.mxu0  ;;  %v798_v17 = vadd.f32 %v1717_v53, %v270_v15 }
 0x138   :  { %v1031_v42 = vmax.f32 %v1002_v35, 0.0  ;;  %v803_v35 = vadd.f32 %v1730_v9, %v280_v31 }
 0x139   :  { %v895_v43 = vpop.f32.mrf.mxu2 }
 0x13a   :  { %1049 = vst [vmem:[#allocation7 + $0x50] sm:$0xff] %v1031_v42  ;;  %v896_v57 = vadd.f32 %v895_v43, %v842_v40  ;;  %v849_v52 = vpop.f32.mrf.mxu1 }
 0x13b   :  { %v954_v1 = vpop.f32.mrf.mxu3  ;;  %v850_v11 = vadd.f32 %v849_v52, %v796_v8 }
 0x13c   :  { %v950_v47 = vadd.f32 %v949_v26, %v896_v57  ;;  %v801_v26 = vadd.f32 %v1724_v59, %v275_v23 }
 0x13e   :  { %v1004_v49 = vadd.f32 %v1003_v30, %v950_v47  ;;  %v1011_v56 = vpop.f32.mrf.mxu0 }
 0x140   :  { %v1032_v51 = vmax.f32 %v1004_v49, 0.0 }
 0x141   :  { %v898_v54 = vpop.f32.mrf.mxu2 }
 0x142   :  { %1050 = vst [vmem:[#allocation7 + $0x58] sm:$0xff] %v1032_v51  ;;  %v899_v55 = vadd.f32 %v898_v54, %v845_v50  ;;  %v851_v12 = vpop.f32.mrf.mxu1 }
 0x143   :  { %v957_v7 = vpop.f32.mrf.mxu3  ;;  %v852_v21 = vadd.f32 %v851_v12, %v798_v17 }
 0x144   :  { %v953_v60 = vadd.f32 %v952_v44, %v899_v55 }
 0x146   :  { %v1007_v0 = vadd.f32 %v1006_v46, %v953_v60  ;;  %v1013_v37 = vpop.f32.mrf.mxu0 }
 0x148   :  { %v1033_v3 = vmax.f32 %v1007_v0, 0.0 }
 0x149   :  { %v900_v4 = vpop.f32.mrf.mxu2 }
 0x14a   :  { %1051 = vst [vmem:[#allocation7 + $0x60] sm:$0xff] %v1033_v3  ;;  %v901_v5 = vadd.f32 %v900_v4, %v847_v2  ;;  %v854_v24 = vpop.f32.mrf.mxu1 }
 0x14b   :  { %v959_v20 = vpop.f32.mrf.mxu3  ;;  %v855_v28 = vadd.f32 %v854_v24, %v801_v26 }
 0x14c   :  { %v955_v6 = vadd.f32 %v954_v1, %v901_v5 }
 0x14e   :  { %v1009_v10 = vadd.f32 %v1008_v63, %v955_v6  ;;  %v1016_v32 = vpop.f32.mrf.mxu0 }
 0x150   :  { %v1034_v58 = vmax.f32 %v1009_v10, 0.0 }
 0x151   :  { %v903_v14 = vpop.f32.mrf.mxu2 }
 0x152   :  { %1052 = vst [vmem:[#allocation7 + $0x68] sm:$0xff] %v1034_v58  ;;  %v904_v19 = vadd.f32 %v903_v14, %v850_v11  ;;  %v856_v34 = vpop.f32.mrf.mxu1 }
 0x153   :  { %v962_v30 = vpop.f32.mrf.mxu3  ;;  %v857_v42 = vadd.f32 %v856_v34, %v803_v35 }
 0x154   :  { %v958_v16 = vadd.f32 %v957_v7, %v904_v19 }
 0x156   :  { %v1012_v18 = vadd.f32 %v1011_v56, %v958_v16  ;;  %v1018_v47 = vpop.f32.mrf.mxu0 }
 0x158   :  { %v1035_v22 = vmax.f32 %v1012_v18, 0.0 }
 0x159   :  { %v905_v61 = vpop.f32.mrf.mxu2 }
 0x15a   :  { %1053 = vst [vmem:[#allocation7 + $0x70] sm:$0xff] %v1035_v22  ;;  %v906_v39 = vadd.f32 %v905_v61, %v852_v21 }
 0x15b   :  { %v964_v59 = vpop.f32.mrf.mxu3 }
 0x15c   :  { %v960_v25 = vadd.f32 %v959_v20, %v906_v39 }
 0x15e   :  { %v1014_v27 = vadd.f32 %v1013_v37, %v960_v25 }
 0x160   :  { %v1036_v29 = vmax.f32 %v1014_v27, 0.0 }
 0x161   :  { %v908_v45 = vpop.f32.mrf.mxu2 }
 0x162   :  { %1054 = vst [vmem:[#allocation7 + $0x78] sm:$0xff] %v1036_v29  ;;  %v909_v53 = vadd.f32 %v908_v45, %v855_v28 }
 0x164   :  { %v963_v33 = vadd.f32 %v962_v30, %v909_v53 }
 0x166   :  { %v1017_v40 = vadd.f32 %v1016_v32, %v963_v33 }
 0x168   :  { %v1037_v43 = vmax.f32 %v1017_v40, 0.0 }
 0x169   :  { %v910_v44 = vpop.f32.mrf.mxu2 }
 0x16a   :  { %1055 = vst [vmem:[#allocation7 + $0x80] sm:$0xff] %v1037_v43  ;;  %v911_v57 = vadd.f32 %v910_v44, %v857_v42 }
 0x16c   :  { %v965_v46 = vadd.f32 %v964_v59, %v911_v57 }
 0x16e   :  { %v1019_v36 = vadd.f32 %v1018_v47, %v965_v46 }
 0x170   :  { %v1038_v48 = vmax.f32 %v1019_v36, 0.0 }
 0x172   :  { %1056 = vst [vmem:[#allocation7 + $0x88] sm:$0xff] %v1038_v48 }
 0x173   :  { %1069 = dma.vmem_to_hbm [thread:$0]  %s1062_s4, 2304, %s1064_s7, [#allocation4], %s1614_s8, %s1614_s8, %s1615_s9  }
 0x174   :  { %1604 = dma.done.wait [#allocation4], 2304  }
 0x175   :  { %1605 = vsyncadd [#allocation4], 4294964992 }
 0x176   :  { %1074 = vsyncpa [#allocation3], 1 }
 0x177   :  { %1075 = vsyncpa [#allocation6], 1 }
 0x178   :  { %1076 = vsyncpa [#allocation4], 1 }

</bundles_post_ra>
